<compile_context>
chip_gen: v7x
topology: tpu7x:2x2x1
jax: 0.10.0
libtpu: 0.0.40
codegen_flags: <defaults>
</compile_context>

<pallas_src>
import functools

import jax
import jax.numpy as jnp
from jax.experimental import pallas as pl
from jax.experimental.pallas import tpu as pltpu


def _round_up(n, m):
    return (n + m - 1) // m * m


# Static per-layer compute kinds.
_FMA = 0      # tiny contraction dim (in_f <= 8): VPU broadcast FMAs
_REDUCE = 1   # single output feature: VPU mul + sublane (XLU) reduction
_MXU = 2      # hidden->hidden: MXU matmul, N dimension = batch_tile


def _layer_meta(params):
    """Static packing metadata from parameter shapes.

    Returns (metas, R, C) where metas[i] = (kind, row_offset, in_f, out_f)
    and the packed buffer is (R, C) float32.
    Packed layout per layer (row_offset is a multiple of 8):
      _FMA / _MXU : W (out_f, in_f) at cols [0, in_f); bias column at col in_f
      _REDUCE     : W^T (in_f, 1) at col 0; bias scalar at (row_offset, 1)
    """
    metas = []
    row_off = 0
    max_cols = 1
    for (w, _) in params:
        out_f, in_f = w.shape
        if in_f <= 8:
            kind, rows, cols = _FMA, out_f, in_f + 1
        elif out_f == 1:
            kind, rows, cols = _REDUCE, in_f, 2
        else:
            kind, rows, cols = _MXU, out_f, in_f + 1
        metas.append((kind, row_off, in_f, out_f))
        row_off += _round_up(rows, 8)
        max_cols = max(max_cols, cols)
    R = _round_up(max(row_off, 8), 8)
    C = _round_up(max_cols, 128)
    return tuple(metas), R, C


def _pack_params(params, metas, R, C):
    """Pack all (W, b) into a single (R, C) f32 buffer (one DMA per kernel)."""
    buf = jnp.zeros((R, C), jnp.float32)
    for (w, b), (kind, off, in_f, out_f) in zip(params, metas):
        w = jnp.asarray(w, jnp.float32)
        b = jnp.asarray(b, jnp.float32).reshape(out_f, 1)
        if kind == _REDUCE:
            buf = buf.at[off:off + in_f, 0:1].set(w.T)          # (in_f, 1)
            buf = buf.at[off:off + 1, 1:2].set(b)               # (1, 1)
        else:
            buf = buf.at[off:off + out_f, 0:in_f].set(w)        # (out_f, in_f)
            buf = buf.at[off:off + out_f, in_f:in_f + 1].set(b)  # bias column
    return buf


def _mlp_kernel(layer_meta, x_ref, p_ref, out_ref):
    """Fused MLP forward in transposed (features, batch) layout.

    x_ref  : (in_f0, TB) input tile, batch on lanes.
    p_ref  : (R, C) packed weights + biases (single BlockSpec, one DMA).
    out_ref: (out_dim, TB) lane-dense output tile.
    """
    n_layers = len(layer_meta)
    a = x_ref[...]  # (in_f0, TB) float32
    for li, (kind, off, in_f, out_f) in enumerate(layer_meta):
        last = li == n_layers - 1
        if kind == _FMA:
            # K <= 8: an MXU pass would waste >98% of the systolic array.
            w = p_ref[pl.ds(off, out_f), pl.ds(0, in_f)]          # (out_f, in_f)
            b = p_ref[pl.ds(off, out_f), pl.ds(in_f, 1)]          # (out_f, 1)
            z = b + w[:, 0:1] * a[0:1, :]
            for k in range(1, in_f):
                z = z + w[:, k:k + 1] * a[k:k + 1, :]
        elif kind == _REDUCE:
            # Single output feature: VPU multiply + sublane reduction writes a
            # lane-dense (1, TB) row instead of an MXU N=1 pass.
            w = p_ref[pl.ds(off, in_f), pl.ds(0, 1)]              # (in_f, 1)
            b = p_ref[pl.ds(off, 1), pl.ds(1, 1)]                 # (1, 1)
            z = jnp.sum(w * a, axis=0, keepdims=True) + b
        else:  # _MXU
            # Hidden->hidden: MXU matmul, N = batch_tile (lane dense).
            w = p_ref[pl.ds(off, out_f), pl.ds(0, in_f)]          # (out_f, in_f)
            b = p_ref[pl.ds(off, out_f), pl.ds(in_f, 1)]          # (out_f, 1)
            z = jnp.dot(w, a, preferred_element_type=jnp.float32) + b
        # jnp.tanh lowers to the EUP transcendental slot (separate bundle
        # slot, otherwise idle) -> effectively free.
        a = z if last else jnp.tanh(z)
    out_ref[...] = a.astype(out_ref.dtype)


def _default_tile_cap():
    # v5e has a single vector-store slot; with very large tiles the spill
    # writeback of the (hidden, TB) f32 intermediates saturates vst first.
    try:
        kind = jax.devices()[0].device_kind.lower()
    except Exception:  # pragma: no cover - defensive
        kind = ""
    if "v5 lite" in kind or "v5e" in kind or "v5litepod" in kind:
        return 1024
    return 4096


@functools.partial(jax.jit, static_argnames=("batch_tile",))
def u_nn_forward(x, params, *, batch_tile=None):
    """Run the fused MLP Pallas kernel.

    x      : (N, in_features) float32 (any N; padded internally).
    params : list of (W, b) with W in torch layout (out_features, in_features),
             b of shape (out_features,).
    Returns (N, out_features) float32.

    The whole function is jit'ed so the transpose / pad / final slice fuse
    with the pallas_call instead of running as separate eager XLA copies.
    """
    N, in_f0 = x.shape
    out_dim = params[-1][0].shape[0]

    # ---- choose a lane-dense batch tile -------------------------------------
    n128 = _round_up(N, 128)
    if batch_tile is None:
        cap = _default_tile_cap()
        # Largest tile (amortize ~0.35us/grid-step) that still leaves >= 2
        # grid steps when the batch allows it, so ("parallel",) can shard
        # tiles across v7x's two TensorCores.
        batch_tile = min(cap, max(128, (n128 // 256) * 128))
    assert batch_tile % 128 == 0 and batch_tile >= 128, \
        "batch_tile must be a positive multiple of 128"
    n_pad = _round_up(N, batch_tile)

    # ---- transposed, zero-padded input: (in_features, n_pad) ----------------
    x_t = jnp.pad(x.astype(jnp.float32).T, ((0, 0), (0, n_pad - N)))

    # ---- pack all weights/biases into one constant buffer -------------------
    metas, R, C = _layer_meta(params)
    packed = _pack_params(params, metas, R, C)

    grid = (n_pad // batch_tile,)
    kernel = functools.partial(_mlp_kernel, metas)

    out_t = pl.pallas_call(
        kernel,
        out_shape=jax.ShapeDtypeStruct((out_dim, n_pad), jnp.float32),
        grid_spec=pltpu.PrefetchScalarGridSpec(
            num_scalar_prefetch=0,
            grid=grid,
            in_specs=[
                pl.BlockSpec((in_f0, batch_tile), lambda i: (0, i)),
                pl.BlockSpec((R, C), lambda i: (0, 0)),   # packed params
            ],
            out_specs=pl.BlockSpec((out_dim, batch_tile), lambda i: (0, i)),
        ),
        compiler_params=pltpu.CompilerParams(
            dimension_semantics=("parallel",)),
    )(x_t, packed)

    # TODO(synk): optional bf16 operands for the hidden MXU matmuls (f32
    # accumulation) would help v6e/v7x but adds ~1e-3 rel. error; kept f32
    # everywhere for PINN-grade accuracy.
    return out_t[:, :N].T  # (N, out_dim)


def init_params(layers_list, key):
    """Deterministic xavier_normal_(gain=1.0) weights, zero biases.

    Returns list of (W, b) in torch layout: W is (out_features, in_features).
    """
    params = []
    for i in range(len(layers_list) - 1):
        fan_in, fan_out = layers_list[i], layers_list[i + 1]
        key, sub = jax.random.split(key)
        std = (2.0 / (fan_in + fan_out)) ** 0.5
        w = std * jax.random.normal(sub, (fan_out, fan_in), dtype=jnp.float32)
        b = jnp.zeros((fan_out,), dtype=jnp.float32)
        params.append((w, b))
    return params


def u_nn_reference(x, params):
    """Pure-JAX reference matching the PyTorch forward()."""
    a = x
    for i, (w, b) in enumerate(params):
        z = a @ w.T + b
        a = jnp.tanh(z) if i < len(params) - 1 else z
    return a


if __name__ == "__main__":
    # Typical Burgers-PINN net: input (x, t) -> hidden 32 -> hidden 32 -> u.
    layers_list = [2, 32, 32, 1]
    N = 256  # collocation points; -> 2 grid steps of 128 (exercises the grid)

    key = jax.random.PRNGKey(0)
    key, kx = jax.random.split(key)
    x = jax.random.uniform(kx, (N, layers_list[0]), dtype=jnp.float32,
                           minval=-1.0, maxval=1.0)
    params = init_params(layers_list, key)

    out = u_nn_forward(x, params)
    out = jax.block_until_ready(out)

    ref = u_nn_reference(x, params)
    assert out.shape == (N, layers_list[-1])
    assert jnp.allclose(out, ref, atol=1e-5, rtol=1e-5), "mismatch vs reference"

    # TODO(synk): loss_bc / loss_ic / loss_pde / total_loss are training-time
    # autograd utilities (MSE + torch.autograd.grad), not part of forward();
    # not implemented as kernels.
    print("KERNEL_OK")
</pallas_src>

<mosaic_0001>
module attributes {stable_mosaic.version = 11 : i64} {
  func.func @_mlp_kernel(%arg0: i32, %arg1: memref<2x128xf32, #tpu.memory_space<vmem>>, %arg2: memref<96x128xf32, #tpu.memory_space<vmem>>, %arg3: memref<1x128xf32, #tpu.memory_space<vmem>>) attributes {dimension_semantics = [#tpu.dimension_semantics<parallel>], iteration_bounds = array<i64: 2>, scalar_prefetch = 0 : i64, scratch_operands = 0 : i64, tpu.core_type = #tpu.core_type<tc>, window_params = [{transform_indices = @transform_0, window_bounds = array<i64: 2, 128>}, {pipeline_mode = #tpu.pipeline_mode<synchronous>, transform_indices = @transform_1, window_bounds = array<i64: 96, 128>}, {transform_indices = @transform_2, window_bounds = array<i64: 1, 128>}]} {
    %c0 = arith.constant 0 : index
    %c0_0 = arith.constant 0 : index
    %0 = vector.load %arg1[%c0, %c0_0] : memref<2x128xf32, #tpu.memory_space<vmem>>, vector<2x128xf32>
    %c0_1 = arith.constant 0 : index
    %c0_2 = arith.constant 0 : index
    %1 = vector.load %arg2[%c0_1, %c0_2] : memref<96x128xf32, #tpu.memory_space<vmem>>, vector<32x2xf32>
    %c0_3 = arith.constant 0 : index
    %c2 = arith.constant 2 : index
    %2 = vector.load %arg2[%c0_3, %c2] : memref<96x128xf32, #tpu.memory_space<vmem>>, vector<32x1xf32>
    %3 = vector.extract_strided_slice %1 {offsets = [0, 0], sizes = [32, 1], strides = [1, 1]} : vector<32x2xf32> to vector<32x1xf32>
    %4 = vector.extract_strided_slice %0 {offsets = [0, 0], sizes = [1, 128], strides = [1, 1]} : vector<2x128xf32> to vector<1x128xf32>
    %5 = vector.broadcast %3 : vector<32x1xf32> to vector<32x128xf32>
    %6 = vector.broadcast %4 : vector<1x128xf32> to vector<32x128xf32>
    %7 = arith.mulf %5, %6 : vector<32x128xf32>
    %8 = vector.broadcast %2 : vector<32x1xf32> to vector<32x128xf32>
    %9 = arith.addf %8, %7 : vector<32x128xf32>
    %10 = vector.extract_strided_slice %1 {offsets = [0, 1], sizes = [32, 1], strides = [1, 1]} : vector<32x2xf32> to vector<32x1xf32>
    %11 = vector.extract_strided_slice %0 {offsets = [1, 0], sizes = [1, 128], strides = [1, 1]} : vector<2x128xf32> to vector<1x128xf32>
    %12 = vector.broadcast %10 : vector<32x1xf32> to vector<32x128xf32>
    %13 = vector.broadcast %11 : vector<1x128xf32> to vector<32x128xf32>
    %14 = arith.mulf %12, %13 : vector<32x128xf32>
    %15 = arith.addf %9, %14 : vector<32x128xf32>
    %16 = math.tanh %15 : vector<32x128xf32>
    %c32 = arith.constant 32 : index
    %c0_4 = arith.constant 0 : index
    %17 = vector.load %arg2[%c32, %c0_4] : memref<96x128xf32, #tpu.memory_space<vmem>>, vector<32x32xf32>
    %c32_5 = arith.constant 32 : index
    %c32_6 = arith.constant 32 : index
    %18 = vector.load %arg2[%c32_5, %c32_6] : memref<96x128xf32, #tpu.memory_space<vmem>>, vector<32x1xf32>
    %cst = arith.constant dense<0.000000e+00> : vector<32x128xf32>
    %19 = tpu.matmul %17, %16, %cst {dimension_numbers = #tpu.dot_dimension_numbers<[1], [0], [0], [1], [0, 0, 1, 1], [], []>} : vector<32x32xf32>, vector<32x128xf32>, vector<32x128xf32> -> vector<32x128xf32>
    %20 = vector.broadcast %18 : vector<32x1xf32> to vector<32x128xf32>
    %21 = arith.addf %19, %20 : vector<32x128xf32>
    %22 = math.tanh %21 : vector<32x128xf32>
    %c64 = arith.constant 64 : index
    %c0_7 = arith.constant 0 : index
    %23 = vector.load %arg2[%c64, %c0_7] : memref<96x128xf32, #tpu.memory_space<vmem>>, vector<32x1xf32>
    %c64_8 = arith.constant 64 : index
    %c1 = arith.constant 1 : index
    %24 = vector.load %arg2[%c64_8, %c1] : memref<96x128xf32, #tpu.memory_space<vmem>>, vector<1x1xf32>
    %25 = vector.broadcast %23 : vector<32x1xf32> to vector<32x128xf32>
    %26 = arith.mulf %25, %22 : vector<32x128xf32>
    %cst_9 = arith.constant dense<0.000000e+00> : vector<128xf32>
    %27 = vector.multi_reduction <add>, %26, %cst_9 [0] : vector<32x128xf32> to vector<128xf32>
    %28 = vector.shape_cast %27 : vector<128xf32> to vector<1x128xf32>
    %29 = vector.broadcast %24 : vector<1x1xf32> to vector<1x128xf32>
    %30 = arith.addf %28, %29 : vector<1x128xf32>
    %c0_10 = arith.constant 0 : index
    %c0_11 = arith.constant 0 : index
    %31 = vector.load %arg3[%c0_10, %c0_11] : memref<1x128xf32, #tpu.memory_space<vmem>>, vector<1x128xf32>
    tpu.vector_store %arg3[%c0_10, %c0_11], %30 {strides = array<i32>} : memref<1x128xf32, #tpu.memory_space<vmem>>, vector<1x128xf32>,
    return
  }
  func.func @transform_0(%arg0: i32) -> (i32, i32) {
    %c0_i32 = arith.constant 0 : i32
    %c0_i32_0 = arith.constant 0 : i32
    return %c0_i32, %arg0 : i32, i32
  }
  func.func @transform_1(%arg0: i32) -> (i32, i32) {
    %c0_i32 = arith.constant 0 : i32
    %c0_i32_0 = arith.constant 0 : i32
    %c0_i32_1 = arith.constant 0 : i32
    return %c0_i32, %c0_i32_0 : i32, i32
  }
  func.func @transform_2(%arg0: i32) -> (i32, i32) {
    %c0_i32 = arith.constant 0 : i32
    %c0_i32_0 = arith.constant 0 : i32
    return %c0_i32, %arg0 : i32, i32
  }
}

</mosaic_0001>

<bundles_post_ra>
// kernel: u_nn_forward.1
= control target key start
LH: loop header
LB: loop body
LE: loop exit
PB: predicated region body
PF: predicated region fallthrough
CT: control target
= control target key end

     0   :  { %7 = vsyncpa [#allocation3], 0  ;;  %s811_s0 = inlined_call_operand.vmem [shape: f32[2,256], index: 0, kind: input, shape index: {}]   ;;  %s812_s1 = inlined_call_operand.vmem [shape: f32[96,128], index: 1, kind: input, shape index: {}]   ;;  %s813_s2 = inlined_call_operand.hbm [shape: f32[1,256], index: 2, kind: output, shape index: {}]  }
   0x1   :  { %9 = vsyncpa [#allocation3 + $0x1], 0  ;;  %s660_s9 = smov 0   ;;  %s662_s10 = smov 0  }
   0x2   :  { %s664_s11 = smov 0   ;;  %s666_s12 = smov 0  }
   0x3 LB: > { %s681_s13 = sadd.s32 4294967295, %s638_s12   ;;  %s458_s14 = sadd.s32 4294967294, %s638_s12   ;;  %s638_s12 = sphi %s666_s12, %s819_s12   ;;  %s634_s11 = sphi %s664_s11, %s818_s11   ;;  %s630_s10 = sphi %s662_s10, %s817_s10   ;;  %s626_s9 = sphi %s660_s9, %s816_s9  }
   0x4   : > { %s685_s15 = sadd.s32 1, %s638_s12   ;;  %s69_s16 = sadd.s32 1, %s634_s11 }
   0x5   : > { %s66_s17 = ssub.s32 %s638_s12, %s685_s15  ;;  %p79_p0 = scmp.ne.s32.totalorder %s634_s11, %s630_s10 }
   0x6   : > { %p67_p1 = scmp.eq.s32.totalorder %s66_s17, 0  ;;  %p80_p2 = scmp.eq.s32.totalorder %s681_s13, 1 }
   0x7   : > { %p85_p3 = scmp.ne.s32.totalorder %s630_s10, %s626_s9  ;;  %p86_p4 = scmp.eq.s32.totalorder %s458_s14, 1 }
   0x8   : > { %s696_s18 = scalar_select %p67_p1, %s634_s11, %s69_s16  }
   0x9   : > { %p698_p5 = por %p80_p2, %p79_p0  ;;  %p702_p6 = por %p86_p4, %p85_p3 }
   0xa   : > { %p461_p7 = scmp.ge.s32.totalorder %s638_s12, 1  ;;  %p114_p8 = scmp.lt.s32.totalorder %s638_s12, 3 }
   0xc   : > { %p115_p9 = pnand %p461_p7, %p114_p8 }
   0xd   : > { %v139_v0 = vld [vmem:[%s812_s1] sm:$0xff] (!%p115_p9)  ;;  %v640_v1 = vmov (!%p115_p9), 2   ;;  %v641_v2 = vmov (!%p115_p9), 0   ;;  %v140_v3 = vld [vmem:[%s812_s1 + $0x8] sm:$0xff] (!%p115_p9)  ;;  %v142_v4 = vld [vmem:[%s812_s1 + $0x18] sm:$0xff] (!%p115_p9)  ;;  %v642_v5 = vmov (!%p115_p9), 1   ;;  %v163_v17 = vlaneseq (!%p115_p9) }
   0xe   : > { %118 = sbr.rel (%p115_p9) target bundleno = 454 (0x1c6), region = 28  ;;  %548 = vset.pattern.permute.xlu1 (!%p115_p9), %v640_v1  ;;  %547 = vset.pattern.permute.xlu0 (!%p115_p9), %v641_v2  ;;  %v141_v6 = vld [vmem:[%s812_s1 + $0x10] sm:$0xff] (!%p115_p9)  ;;  %v223_v7 = vld [vmem:[%s812_s1 + $0x20] sm:$0xff] (!%p115_p9)  ;;  %vm247_vm0 = vcmask (!%p115_p9), 261120   ;;  %v731_v9 = vld [vmem:[%s812_s1 + $0x28] sm:$0xff] (!%p115_p9)  ;;  %v643_v10 = vmov (!%p115_p9), 32  }
   0xf   : > { %172 = vperm.xlu1 (!%p115_p9), %548, %v139_v0   ;;  %145 = vperm.xlu0 (!%p115_p9), %547, %v139_v0   ;;  %v225_v8 = vld [vmem:[%s812_s1 + $0x30] sm:$0xff] (!%p115_p9)  ;;  %v345_v11 = vld [vmem:[%s812_s1 + $0x40] sm:$0xff] (!%p115_p9)  ;;  %v348_v12 = vld [vmem:[%s812_s1 + $0x58] sm:$0xff] (!%p115_p9)  ;;  %p134_p10 = scmp.lt.s32.totalorder (!%p115_p9), %s681_s13, 1  ;;  %v164_v18 = vshrl.u32 (!%p115_p9), %v163_v17, 7  ;;  %s132_s5 = sand.u32 (!%p115_p9), 1, %s630_s10  }
  0x10   : > { %486 = vmatprep.mubr.msk.f32.mxu0 (!%p115_p9), %vm247_vm0, %v223_v7  ;;  %489 = vmatprep.mubr.msk.f32.mxu1 (!%p115_p9), %vm247_vm0, %v225_v8  ;;  %v743_v13 = vld [vmem:[%s812_s1 + $0x38] sm:$0xff] (!%p115_p9)  ;;  %v346_v14 = vld [vmem:[%s812_s1 + $0x48] sm:$0xff] (!%p115_p9)  ;;  %v347_v15 = vld [vmem:[%s812_s1 + $0x50] sm:$0xff] (!%p115_p9)  ;;  %s467_s6 = sshll.u32 (!%p115_p9), %s681_s13, 4  ;;  %s133_s7 = scalar_lea.vmem (!%p115_p9), [#allocation2], %s132_s5 }
  0x11   : > { %v349_v16 = vld [vmem:[%s812_s1 + $0x40] sm:$0x1] (!%p115_p9)  ;;  %v165_v21 = vsub.s32 (!%p115_p9), 0, %v164_v18  ;;  %v209_v23 = vsub.s32 (!%p115_p9), 1, %v164_v18  ;;  %s403_s8 = sshll.u32 (!%p115_p9), %s133_s7, 4  ;;  %s769_s17 = scalar_lea.hbm (!%p115_p9), %s813_s2, %s467_s6  ;;  %s771_s8 = int_to_ptr.vmem [resolvable:$true] %s403_s8 }
  0x12   : > { %s391_s21 = scalar_lea.sflag (!%p115_p9), [#allocation3], %s132_s5  ;;  %s576_s22 = scalar_lea.vmem (!%p115_p9), %s771_s8, 16 }
  0x13   : > { %176 = vperm.xlu1 (!%p115_p9), %548, %v140_v3   ;;  %150 = vperm.xlu0 (!%p115_p9), %547, %v140_v3   ;;  %p577_p11 = scmp.ne.s32.totalorder (!%p115_p9), %s771_s8, %s576_s22 }
  0x15   : > { %s135_s28 = scalar_select %p134_p10, %s681_s13, 1 }
  0x16   : > { %p578_p12 = pnand %p577_p11, %p698_p5  ;;  %s644_s13 = smov [#allocation2]  }
  0x17   : > { %549 = vset.pattern.permute.xlu1 %v642_v5  ;;  %160 = vperm.xlu0 %547, %v142_v4   ;;  %s462_s29 = sshll.u32 %s135_s28, 1  ;;  %s580_s23 = sshll.u32 %s644_s13, 4  ;;  %s581_s23 = int_to_ptr.vmem [resolvable:$false] %s580_s23 }
  0x18   : > { %196 = vperm.xlu1 %549, %v140_v3   ;;  %s137_s4 = scalar_lea.vmem %s811_s0, %s462_s29  ;;  %p579_p13 = pneg %p578_p12 }
  0x19   : > { %v138_v22 = vld [vmem:[%s137_s4] sm:$0x3]  ;;  %s582_s24 = scalar_lea.vmem %s581_s23, 32  ;;  %p583_p0 = scmp.lt.s32.totalorder %s771_s8, %s581_s23 }
  0x1a   : > { %v166_v26 = vrot.slane %v138_v22, %v165_v21  ;;  %v210_v27 = vrot.slane %v138_v22, %v209_v23  ;;  %p584_p1 = scmp.lt.s32.totalorder %s582_s24, %s576_s22 }
  0x1b   : > { %551 = vset.pattern.permute.xlu0 %v642_v5 }
  0x1c   : > { %550 = vset.pattern.permute.xlu1 %v641_v2  ;;  %192 = vperm.xlu0 %551, %v139_v0   ;;  %p585_p2 = por %p584_p1, %p583_p0 }
  0x1d   : > { %155 = vperm.xlu1 %550, %v141_v6  }
  0x1e   : > { %p586_p3 = pnand %p585_p2, %p579_p13 }
  0x20   : > { %200 = vperm.xlu0 %551, %v141_v6  }
  0x21   : > { %552 = vset.pattern.permute.xlu1 %v640_v1 }
  0x22   : > { %180 = vperm.xlu1 %552, %v141_v6  }
  0x24   : > { %555 = vset.pattern.permute.xlu0 %v643_v10 }
  0x25   : > { %234 = vperm.xlu0 %555, %v731_v9  }
  0x26   : > { %184 = vperm.xlu1 %552, %v142_v4  }
  0x29   : > { %556 = vset.pattern.permute.xlu0 %v641_v2 }
  0x2a   : > { %553 = vset.pattern.permute.xlu1 %v642_v5  ;;  %352 = vperm.xlu0 %556, %v345_v11  }
  0x2b   : > { %204 = vperm.xlu1 %553, %v142_v4  }
  0x2e   : > { %367 = vperm.xlu0 %556, %v348_v12  }
  0x2f   : > { %554 = vset.pattern.permute.xlu1 %v643_v10 }
  0x30   : > { %229 = vperm.xlu1 %554, %v223_v7  }
  0x32   : > { %559 = vset.pattern.permute.xlu0 %v642_v5 }
  0x34   : > { %239 = vperm.xlu1 %554, %v225_v8  }
  0x38   : > { %244 = vperm.xlu1 %554, %v743_v13  }
  0x3c   : > { %557 = vset.pattern.permute.xlu1 %v641_v2 }
  0x3d   : > { %357 = vperm.xlu1 %557, %v346_v14  }
  0x41   : > { %362 = vperm.xlu1 %557, %v347_v15  }
  0x45   : > { %558 = vset.pattern.permute.xlu1 %v642_v5 }
  0x46   : > { %385 = vperm.xlu1 %558, %v349_v16  }
  0x8e   : > { %v173_v19 = vpop.permute.xlu1 %172  ;;  %v146_v20 = vpop.permute.xlu0 %145 }
  0x8f   : > { %v167_v31 = vmul.f32 %v166_v26, %v146_v20 }
  0x91   : > { %v187_v36 = vadd.f32 %v173_v19, %v167_v31 }
  0x92   : > { %v177_v24 = vpop.permute.xlu1 %176  ;;  %v151_v25 = vpop.permute.xlu0 %150 }
  0x93   : > { %v168_v28 = vmul.f32 %v166_v26, %v151_v25 }
  0x95   : > { %v188_v33 = vadd.f32 %v177_v24, %v168_v28 }
  0x96   : > { %v161_v29 = vpop.permute.xlu0 %160 }
  0x97   : > { %v197_v30 = vpop.permute.xlu1 %196  ;;  %v170_v47 = vmul.f32 %v166_v26, %v161_v29 }
  0x98   : > { %v212_v32 = vmul.f32 %v210_v27, %v197_v30 }
  0x9a   : > { %v216_v34 = vadd.f32 %v212_v32, %v188_v33 }
  0x9b   : > { %v193_v35 = vpop.permute.xlu0 %192 }
  0x9c   : > { %v211_v37 = vmul.f32 %v210_v27, %v193_v35  ;;  %v156_v38 = vpop.permute.xlu1 %155  ;;  %560 = vtanh.f32 %v216_v34 }
  0x9d   : > { %v169_v42 = vmul.f32 %v166_v26, %v156_v38 }
  0x9e   : > { %v215_v39 = vadd.f32 %v211_v37, %v187_v36 }
  0x9f   : > { %v201_v41 = vpop.permute.xlu0 %200 }
  0xa0   : > { %562 = vtanh.f32 %v215_v39  ;;  %v213_v45 = vmul.f32 %v210_v27, %v201_v41 }
  0xa1   : > { %v181_v40 = vpop.permute.xlu1 %180 }
  0xa2   : > { %v189_v44 = vadd.f32 %v181_v40, %v169_v42 }
  0xa4   : > { %v217_v49 = vadd.f32 %v213_v45, %v189_v44  ;;  %v235_v60 = vpop.permute.xlu0 %234 }
  0xa5   : > { %v185_v43 = vpop.permute.xlu1 %184 }
  0xa6   : > { %v561_v46 = vpop.eup %560  ;;  %v190_v51 = vadd.f32 %v185_v43, %v170_v47  ;;  %564 = vtanh.f32 %v217_v49 }
  0xa9   : > { %v353_v7 = vpop.permute.xlu0 %352 }
  0xaa   : > { %v563_v48 = vpop.eup %562  ;;  %v205_v50 = vpop.permute.xlu1 %204 }
  0xab   : > { %v214_v52 = vmul.f32 %v210_v27, %v205_v50  ;;  %v492_v53 = vpack.c.bf16 %v561_v46, %v563_v48 }
  0xad   : > { %v218_v54 = vadd.f32 %v214_v52, %v190_v51  ;;  %493 = vmatprep.subr.bf16.mxu0 %v492_v53  ;;  %500 = vmatprep.subr.bf16.mxu1 %v492_v53  ;;  %v368_v15 = vpop.permute.xlu0 %367 }
  0xae   : > { %495 = vmatpush3.bf16.msra.mxu0 %v492_v53  ;;  %502 = vmatpush3.bf16.msra.mxu1 %v492_v53 }
  0xaf   : > { %566 = vtanh.f32 %v218_v54  ;;  %v230_v58 = vpop.permute.xlu1 %229 }
  0xb0   : > { %v565_v55 = vpop.eup %564 }
  0xb3   : > { %v240_v59 = vpop.permute.xlu1 %239 }
  0xb7   : > { %v245_v2 = vpop.permute.xlu1 %244 }
  0xb9   : > { %v567_v56 = vpop.eup %566 }
  0xba   : > { %v496_v57 = vpack.c.bf16 %v567_v56, %v565_v55 }
  0xbc   : > { %497 = vmatprep.subr.bf16.mxu0 %v496_v57  ;;  %501 = vmatprep.subr.bf16.mxu1 %v496_v57  ;;  %v358_v6 = vpop.permute.xlu1 %357 }
  0xbd   : > { %499 = vmatpush3.bf16.msra.mxu0 %v496_v57  ;;  %503 = vmatpush3.bf16.msra.mxu1 %v496_v57 }
  0xc0   : > { %487 = vmatmul.mubr.msk.f32.vlgmr.msra.gmra.mrb[0].mxu0 %vm247_vm0, %v731_v9  ;;  %490 = vmatmul.mubr.msk.f32.vlgmr.msra.gmra.mrb[0].mxu1 %vm247_vm0, %v743_v13  ;;  %v363_v14 = vpop.permute.xlu1 %362 }
  0xc5   : > { %v386_v26 = vpop.permute.xlu1 %385 }
 0x193   : > { %v488_v61 = vpop.f32.mrb[0].mxu0  ;;  %v491_v62 = vpop.f32.mrb[0].mxu1 }
 0x194   : > { %v328_v63 = vadd.f32 %v488_v61, %v235_v60  ;;  %v322_v0 = vpop.f32.mrb[1].mxu0  ;;  %v332_v1 = vpop.f32.mrb[1].mxu1  ;;  %v338_v5 = vadd.f32 %v491_v62, %v245_v2 }
 0x195   : > { %v323_v3 = vadd.f32 %v322_v0, %v230_v58  ;;  %v333_v4 = vadd.f32 %v332_v1, %v240_v59 }
 0x196   : > { %568 = vtanh.f32 %v328_v63 }
 0x197   : > { %570 = vtanh.f32 %v323_v3 }
 0x198   : > { %572 = vtanh.f32 %v333_v4 }
 0x199   : > { %574 = vtanh.f32 %v338_v5 }
 0x1a0   : > { %v569_v8 = vpop.eup %568 }
 0x1a1   : > { %v371_v9 = vmul.f32 %v569_v8, %v358_v6  ;;  %v571_v10 = vpop.eup %570 }
 0x1a2   : > { %v573_v11 = vpop.eup %572  ;;  %v370_v12 = vmul.f32 %v571_v10, %v353_v7 }
 0x1a3   : > { %v575_v13 = vpop.eup %574  ;;  %v372_v17 = vmul.f32 %v573_v11, %v363_v14 }
 0x1a4   : > { %v374_v16 = vadd.f32 %v371_v9, %v370_v12  ;;  %v373_v19 = vmul.f32 %v575_v13, %v368_v15 }
 0x1a6   : > { %v375_v18 = vadd.f32 %v374_v16, %v372_v17 }
 0x1a8   : > { %v376_v20 = vadd.f32 %v375_v18, %v373_v19 }
 0x1aa   : > { %v377_v21 = vrot.slane %v376_v20, 4 }
 0x1ac   : > { %v378_v22 = vadd.f32 %v377_v21, %v376_v20 }
 0x1ae   : > { %v379_v23 = vrot.slane %v378_v22, 2 }
 0x1b0   : > { %v380_v24 = vadd.f32 %v379_v23, %v378_v22 }
 0x1b2   : > { %v381_v25 = vrot.slane %v380_v24, 1 }
 0x1b4   : > { %v382_v27 = vadd.f32 %v381_v25, %v380_v24 }
 0x1b6   : > { %v388_v28 = vadd.f32 %v386_v26, %v382_v27 }
 0x1b8   : > { %389 = vst [vmem:[%s133_s7] sm:$0x1] %v388_v28 }
 0x1b9   : > { %589 = shalt.err (!%p586_p3)
}
 0x1ba   : > { %s590_s25 = scalar_lea.hbm %s769_s17, 16  ;;  %s594_s28 = scalar_lea.hbm %s813_s2, 32 }
 0x1bb   : > { %p591_p4 = scmp.ne.s32.totalorder %s769_s17, %s590_s25  ;;  %p595_p9 = scmp.lt.u32.totalorder %s769_s17, %s813_s2 }
 0x1bc   : > { %p596_p10 = scmp.lt.u32.totalorder %s594_s28, %s590_s25  ;;  %p598_p12 = scmp.lt.u32.totalorder %s590_s25, %s769_s17 }
 0x1bd   : > { %p592_p7 = pnand %p591_p4, %p698_p5 }
 0x1be   : > { %p597_p11 = por %p596_p10, %p595_p9 }
 0x1bf   : > { %p593_p8 = pneg %p592_p7 }
 0x1c0   : > { %p599_p13 = por %p598_p12, %p597_p11 }
 0x1c2   : > { %p600_p0 = pnand %p599_p13, %p593_p8 }
 0x1c4   : > { %603 = shalt.err (!%p600_p0)
}
 0x1c5   : > { %504 = dma.vmem_to_hbm [thread:$0]  (%p698_p5), %s771_s8, 16, %s769_s17, %s391_s21  }
 0x1c6 PF: > { %p510_p1 = scmp.ge.s32.totalorder %s638_s12, 2  ;;  %s415_s3 = sand.u32 1, %s626_s9  }
 0x1c7   : > { %s416_s4 = scalar_lea.sflag [#allocation3], %s415_s3 }
 0x1c8   : > { %p507_p2 = pnand %p510_p1, %p702_p6 }
 0x1ca   : > { %621 = dma.done.wait (!%p507_p2), %s416_s4, 16  }
 0x1cb   : > { %623 = vsyncadd (!%p507_p2), %s416_s4, 4294967280  ;;  %p12_p3 = scmp.ge.s32.totalorder %s685_s15, 4   ;;  %s816_s9 = smov %s630_s10 }
 0x1cc   : > { %s817_s10 = smov %s634_s11  ;;  %s818_s11 = smov %s696_s18 }
 0x1cd   : > { %s819_s12 = smov %s685_s15  ;;  %14 = sbr.rel (!%p12_p3) target bundleno = 3 (0x3), region = 63 }
 0x1d4   :  { %420 = vsyncpa [#allocation3], 1 }
 0x1d5   :  { %422 = vsyncpa [#allocation3 + $0x1], 1 }

</bundles_post_ra>
